<compile_context>
chip_gen: v7x
topology: tpu7x:2x2x1
jax: 0.10.0
libtpu: 0.0.40
codegen_flags: <defaults>
</compile_context>

<pallas_src>
import jax
import jax.numpy as jnp
from jax import lax
from jax.experimental import pallas as pl
from jax.experimental.pallas import tpu as pltpu

EPS = 1e-6                       # default eps of AxisAlignedBboxOverlaps3D
_BOX = 6                         # coords per box
_BOXES_PER_ROW = 128             # boxes per 768-lane row
_LANES = _BOXES_PER_ROW * _BOX   # 768 (multiple of 128 -> dense vregs / DMAs)
_CHUNK = 8                       # sublane rows per in-kernel step (8x768 = 6 vregs)
_MAX_ROWS_PER_TILE = 1024        # 1024*768*4 B = 3 MiB per operand tile
_VMEM_LIMIT = 40 * 1024 * 1024   # fits v5e/v6e (128 MiB) and v7x (64 MiB) VMEM


# ---------------------------------------------------------------------------
# In-kernel math on the lane-interleaved layout
#   row r, lane j = 6*q + c  <->  box (128*r + q), coordinate c
# ---------------------------------------------------------------------------
def _shl(x, k):
    """y[..., j] = x[..., j + k] for j < L - k (wrapped lanes are never kept)."""
    return jnp.concatenate([x[:, k:], x[:, :k]], axis=1)


def _prod3(x):
    """At lanes j % 6 == 0: x[j] * x[j+1] * x[j+2]."""
    return x * _shl(x, 1) * _shl(x, 2)


def _chunk_loss(p, t):
    """p, t: (C, 768) f32, interleaved (x1,y1,z1,x2,y2,z2) per box.

    Returns (C, 768); the valid per-box loss sits at lanes j % 6 == 0, other
    lanes hold don't-care values (finite for in-bounds rows).
    """
    p_hi = _shl(p, 3)                       # max-corner coords aligned to c < 3
    t_hi = _shl(t, 3)
    size_p = p_hi - p                       # per-axis box sizes (valid c < 3)
    size_t = t_hi - t
    inter = jnp.maximum(jnp.minimum(p_hi, t_hi) - jnp.maximum(p, t), 0.0)
    vol_p = _prod3(size_p)                  # valid at c == 0
    vol_t = _prod3(size_t)
    overlap = _prod3(inter)
    union = jnp.maximum(vol_p + vol_t - overlap, EPS)
    # exact divide (approx reciprocal not needed; EUP/VPU have slack)
    return 1.0 - overlap / union


# ---------------------------------------------------------------------------
# Kernels
# ---------------------------------------------------------------------------
def _make_none_kernel(tb, chunk):
    """Per-box loss tiles: output block (tb, 768), processed in 8-row chunks."""
    nchunks = tb // chunk

    def kernel(pred_ref, tgt_ref, out_ref):
        def body(j, carry):
            s = pl.multiple_of(j * chunk, chunk)
            p = pred_ref[pl.ds(s, chunk), :]
            t = tgt_ref[pl.ds(s, chunk), :]
            out_ref[pl.ds(s, chunk), :] = _chunk_loss(p, t)
            return carry

        lax.fori_loop(0, nchunks, body, 0)

    return kernel


def _make_sum_kernel(tb, chunk, rows_total):
    """Per-tile partial sums: chunked (chunk, 768) accumulator, folded to
    a dense (chunk, 128) output block (unmasked stores)."""
    nchunks = tb // chunk

    def kernel(pred_ref, tgt_ref, psum_ref):
        row0 = pl.program_id(0) * tb
        lane = lax.broadcasted_iota(jnp.int32, (chunk, _LANES), 1)
        # exact lane // 6 for lane < 32768 without a vector integer divide
        lane_c = lane - 6 * ((lane * 10923) >> 16)
        lane_ok = lane_c == 0
        row_in_chunk = lax.broadcasted_iota(jnp.int32, (chunk, _LANES), 0)

        def body(j, acc):
            s = pl.multiple_of(j * chunk, chunk)
            p = pred_ref[pl.ds(s, chunk), :]
            t = tgt_ref[pl.ds(s, chunk), :]
            loss = _chunk_loss(p, t)
            # mask non-c0 lanes and rows beyond the (ragged) valid range
            row_ok = (row0 + s + row_in_chunk) < rows_total
            ok = jnp.logical_and(lane_ok, row_ok)
            return acc + jnp.where(ok, loss, 0.0)

        acc = lax.fori_loop(0, nchunks, body,
                            jnp.zeros((chunk, _LANES), jnp.float32))
        # fold the six 128-lane groups -> dense (chunk, 128) partial sums
        psum_ref[...] = (acc[:, 0:128] + acc[:, 128:256] + acc[:, 256:384] +
                         acc[:, 384:512] + acc[:, 512:640] + acc[:, 640:768])

    return kernel


# ---------------------------------------------------------------------------
# Wrappers
# ---------------------------------------------------------------------------
def _tile_plan(rows):
    """rows = number of 128-box rows.  Returns (rows_per_tile, num_tiles).

    - rows_per_tile is a multiple of 8 (or == rows for tiny inputs),
    - >= 2 tiles whenever there is enough work (feeds both v7x TensorCores),
    - per-tile padding waste never exceeds one 8-row group (ragged last tile
      is masked in-kernel instead of padded in HBM).
    """
    if rows <= _CHUNK:
        return rows, 1
    num_tiles = max(2, pl.cdiv(rows, _MAX_ROWS_PER_TILE))
    tb = ((pl.cdiv(rows, num_tiles) + _CHUNK - 1) // _CHUNK) * _CHUNK
    return tb, pl.cdiv(rows, tb)


def _to_rows(boxes2d):
    """(N, 6) f32 -> (R, 768).  Pure (layout-compatible) reshape; only the
    <=127-box tail is padded (with unit boxes, identical for pred & target so
    the padded loss is exactly 0)."""
    n = boxes2d.shape[0]
    n_pad = ((n + _BOXES_PER_ROW - 1) // _BOXES_PER_ROW) * _BOXES_PER_ROW
    if n_pad != n:
        filler = jnp.broadcast_to(
            jnp.asarray([0., 0., 0., 1., 1., 1.], jnp.float32),
            (n_pad - n, _BOX))
        boxes2d = jnp.concatenate([boxes2d, filler], axis=0)
    return boxes2d.reshape(n_pad // _BOXES_PER_ROW, _LANES)


def _pallas_common(rows):
    tb, num_tiles = _tile_plan(rows)
    chunk = min(_CHUNK, tb)
    in_specs = [pl.BlockSpec((tb, _LANES), lambda i: (i, 0)),
                pl.BlockSpec((tb, _LANES), lambda i: (i, 0))]
    params = pltpu.CompilerParams(dimension_semantics=("parallel",),
                                  vmem_limit_bytes=_VMEM_LIMIT)
    return tb, num_tiles, chunk, in_specs, params


def _iou_loss_per_box(pred2d, tgt2d):
    """Returns per-box loss, shape (N,)."""
    n = pred2d.shape[0]
    pred_rows = _to_rows(pred2d)
    tgt_rows = _to_rows(tgt2d)
    rows = pred_rows.shape[0]
    tb, num_tiles, chunk, in_specs, params = _pallas_common(rows)

    out = pl.pallas_call(
        _make_none_kernel(tb, chunk),
        out_shape=jax.ShapeDtypeStruct((rows, _LANES), jnp.float32),
        grid=(num_tiles,),
        in_specs=in_specs,
        out_specs=pl.BlockSpec((tb, _LANES), lambda i: (i, 0)),
        compiler_params=params,
    )(pred_rows, tgt_rows)
    # valid per-box losses sit at lanes j % 6 == 0 -> single strided extract
    return out.reshape(-1, _BOX)[:n, 0]


def _iou_loss_total(pred2d, tgt2d):
    """Returns scalar sum of per-box losses (no per-box writeback)."""
    pred_rows = _to_rows(pred2d)
    tgt_rows = _to_rows(tgt2d)
    rows = pred_rows.shape[0]
    tb, num_tiles, chunk, in_specs, params = _pallas_common(rows)

    psums = pl.pallas_call(
        _make_sum_kernel(tb, chunk, rows),
        out_shape=jax.ShapeDtypeStruct((num_tiles * chunk, _BOXES_PER_ROW),
                                       jnp.float32),
        grid=(num_tiles,),
        in_specs=in_specs,
        out_specs=pl.BlockSpec((chunk, _BOXES_PER_ROW), lambda i: (i, 0)),
        compiler_params=params,
    )(pred_rows, tgt_rows)
    return jnp.sum(psums)


def axis_aligned_iou_loss(pred, target, weight=None, avg_factor=None,
                          reduction='mean'):
    """JAX/Pallas equivalent of the @weighted_loss-decorated function."""
    assert pred.shape == target.shape and pred.shape[-1] == 6
    lead_shape = pred.shape[:-1]
    pred2d = pred.reshape(-1, _BOX).astype(jnp.float32)
    tgt2d = target.reshape(-1, _BOX).astype(jnp.float32)
    n = pred2d.shape[0]

    # Fast path: sum/mean with no per-element weight -> partial-sum kernel.
    if weight is None and reduction in ('sum', 'mean'):
        total = _iou_loss_total(pred2d, tgt2d)
        if reduction == 'sum':
            assert avg_factor is None, \
                'avg_factor can not be used with reduction="sum"'
            return total
        denom = n if avg_factor is None else avg_factor
        return total / denom

    # General path: per-box loss, weight/reduction applied outside.
    # TODO(synk): weight could be fused into the sum kernel as a third operand
    # for weighted sum/mean (saves ~2 extra HBM passes over an N-sized array).
    per_box = _iou_loss_per_box(pred2d, tgt2d).reshape(lead_shape)
    if weight is not None:
        per_box = per_box * weight
    if reduction == 'none':
        return per_box
    total = jnp.sum(per_box)
    if reduction == 'sum':
        assert avg_factor is None, \
            'avg_factor can not be used with reduction="sum"'
        return total
    denom = per_box.size if avg_factor is None else avg_factor
    return total / denom


class AxisAlignedIoULoss:
    """Calculate the IoU loss (1-IoU) of axis aligned bounding boxes."""

    def __init__(self, reduction='mean', loss_weight=1.0):
        assert reduction in ('none', 'sum', 'mean')
        self.reduction = reduction
        self.loss_weight = loss_weight

    def __call__(self, pred, target, weight=None, avg_factor=None,
                 reduction_override=None):
        assert reduction_override in (None, 'none', 'mean', 'sum')
        reduction = reduction_override if reduction_override else self.reduction
        # TODO(synk): the torch fast-path `if weight is not None and not
        # any(weight > 0)` is data-dependent control flow; not replicated here.
        return axis_aligned_iou_loss(
            pred, target, weight=weight, avg_factor=avg_factor,
            reduction=reduction) * self.loss_weight


# ---------------------------------------------------------------------------
# Pure-JAX reference for correctness checking
# ---------------------------------------------------------------------------
def _reference_loss(pred, target):
    vol_p = jnp.prod(pred[..., 3:] - pred[..., :3], axis=-1)
    vol_t = jnp.prod(target[..., 3:] - target[..., :3], axis=-1)
    lt = jnp.maximum(pred[..., :3], target[..., :3])
    rb = jnp.minimum(pred[..., 3:], target[..., 3:])
    wh = jnp.maximum(rb - lt, 0.0)
    overlap = jnp.prod(wh, axis=-1)
    union = jnp.maximum(vol_p + vol_t - overlap, EPS)
    return 1.0 - overlap / union


if __name__ == "__main__":
    key = jax.random.PRNGKey(0)
    k1, k2, k3, k4 = jax.random.split(key, 4)

    # small case: lead shape (2, 100) -> 200 boxes (exercises tail padding)
    B, M = 2, 100
    p_min = jax.random.uniform(k1, (B, M, 3), minval=-2.0, maxval=2.0)
    p_size = jax.random.uniform(k2, (B, M, 3), minval=0.2, maxval=2.0)
    t_min = jax.random.uniform(k3, (B, M, 3), minval=-2.0, maxval=2.0)
    t_size = jax.random.uniform(k4, (B, M, 3), minval=0.2, maxval=2.0)
    pred = jnp.concatenate([p_min, p_min + p_size], axis=-1)      # (2, 100, 6)
    target = jnp.concatenate([t_min, t_min + t_size], axis=-1)    # (2, 100, 6)
    ref = _reference_loss(pred, target)

    out_mean = jax.block_until_ready(
        AxisAlignedIoULoss(reduction='mean', loss_weight=1.0)(pred, target))
    assert jnp.allclose(out_mean, jnp.mean(ref), atol=1e-5, rtol=1e-5), \
        (out_mean, jnp.mean(ref))

    out_none = jax.block_until_ready(
        AxisAlignedIoULoss(reduction='none')(pred, target))
    assert out_none.shape == (B, M)
    assert jnp.allclose(out_none, ref, atol=1e-5, rtol=1e-5)

    w = jax.random.uniform(jax.random.PRNGKey(7), (B, M), minval=0.0, maxval=2.0)
    out_w = jax.block_until_ready(
        AxisAlignedIoULoss(reduction='mean')(pred, target, weight=w))
    assert jnp.allclose(out_w, jnp.sum(ref * w) / (B * M), atol=1e-5, rtol=1e-5)

    # larger case: 1500 boxes -> multi-tile grid + ragged-row masking paths
    N2 = 1500
    kk = jax.random.split(jax.random.PRNGKey(1), 4)
    q_min = jax.random.uniform(kk[0], (N2, 3), minval=-3.0, maxval=3.0)
    q_size = jax.random.uniform(kk[1], (N2, 3), minval=0.1, maxval=2.5)
    r_min = jax.random.uniform(kk[2], (N2, 3), minval=-3.0, maxval=3.0)
    r_size = jax.random.uniform(kk[3], (N2, 3), minval=0.1, maxval=2.5)
    pred2 = jnp.concatenate([q_min, q_min + q_size], axis=-1)     # (1500, 6)
    target2 = jnp.concatenate([r_min, r_min + r_size], axis=-1)   # (1500, 6)
    ref2 = _reference_loss(pred2, target2)

    out_sum = jax.block_until_ready(
        AxisAlignedIoULoss(reduction='sum')(pred2, target2))
    assert jnp.allclose(out_sum, jnp.sum(ref2), atol=1e-3, rtol=1e-5)

    out_none2 = jax.block_until_ready(
        AxisAlignedIoULoss(reduction='none')(pred2, target2))
    assert out_none2.shape == (N2,)
    assert jnp.allclose(out_none2, ref2, atol=1e-5, rtol=1e-5)

    print("KERNEL_OK")
</pallas_src>

<mosaic_0001>
module attributes {stable_mosaic.version = 11 : i64} {
  func.func @kernel(%arg0: i32, %arg1: memref<2x768xf32, #tpu.memory_space<vmem>>, %arg2: memref<2x768xf32, #tpu.memory_space<vmem>>, %arg3: memref<2x128xf32, #tpu.memory_space<vmem>>) attributes {dimension_semantics = [#tpu.dimension_semantics<parallel>], iteration_bounds = array<i64: 1>, scalar_prefetch = 0 : i64, scratch_operands = 0 : i64, tpu.core_type = #tpu.core_type<tc>, window_params = [{transform_indices = @transform_0, window_bounds = array<i64: 2, 768>}, {transform_indices = @transform_1, window_bounds = array<i64: 2, 768>}, {transform_indices = @transform_2, window_bounds = array<i64: 2, 128>}]} {
    %c2_i32 = arith.constant 2 : i32
    %0 = arith.muli %arg0, %c2_i32 : i32
    %1 = tpu.iota {dimensions = array<i32: 1>} : vector<2x768xi32>
    %c10923_i32 = arith.constant 10923 : i32
    %2 = vector.broadcast %c10923_i32 : i32 to vector<2x768xi32>
    %3 = arith.muli %1, %2 : vector<2x768xi32>
    %c16_i32 = arith.constant 16 : i32
    %4 = vector.broadcast %c16_i32 : i32 to vector<2x768xi32>
    %5 = arith.shrsi %3, %4 : vector<2x768xi32>
    %c6_i32 = arith.constant 6 : i32
    %6 = vector.broadcast %c6_i32 : i32 to vector<2x768xi32>
    %7 = arith.muli %6, %5 : vector<2x768xi32>
    %8 = arith.subi %1, %7 : vector<2x768xi32>
    %c0_i32 = arith.constant 0 : i32
    %9 = vector.broadcast %c0_i32 : i32 to vector<2x768xi32>
    %10 = arith.cmpi eq, %8, %9 : vector<2x768xi32>
    %11 = tpu.iota {dimensions = array<i32: 0>} : vector<2x768xi32>
    %cst = arith.constant 0.000000e+00 : f32
    %12 = vector.broadcast %cst : f32 to vector<2x768xf32>
    %c0_i32_0 = arith.constant 0 : i32
    %c2_i32_1 = arith.constant 2 : i32
    %13 = arith.muli %c0_i32_0, %c2_i32_1 : i32
    %14 = tpu.assume_multiple %13, 2 : i32
    %15 = arith.index_cast %14 : i32 to index
    %c0 = arith.constant 0 : index
    %16 = vector.load %arg1[%15, %c0] : memref<2x768xf32, #tpu.memory_space<vmem>>, vector<2x768xf32>
    %17 = arith.index_cast %14 : i32 to index
    %c0_2 = arith.constant 0 : index
    %18 = vector.load %arg2[%17, %c0_2] : memref<2x768xf32, #tpu.memory_space<vmem>>, vector<2x768xf32>
    %19 = vector.extract_strided_slice %16 {offsets = [0, 3], sizes = [2, 765], strides = [1, 1]} : vector<2x768xf32> to vector<2x765xf32>
    %20 = vector.extract_strided_slice %16 {offsets = [0, 0], sizes = [2, 3], strides = [1, 1]} : vector<2x768xf32> to vector<2x3xf32>
    %21 = tpu.concatenate %19, %20 in 1 : vector<2x765xf32>, vector<2x3xf32> -> vector<2x768xf32>
    %22 = vector.extract_strided_slice %18 {offsets = [0, 3], sizes = [2, 765], strides = [1, 1]} : vector<2x768xf32> to vector<2x765xf32>
    %23 = vector.extract_strided_slice %18 {offsets = [0, 0], sizes = [2, 3], strides = [1, 1]} : vector<2x768xf32> to vector<2x3xf32>
    %24 = tpu.concatenate %22, %23 in 1 : vector<2x765xf32>, vector<2x3xf32> -> vector<2x768xf32>
    %25 = arith.subf %21, %16 : vector<2x768xf32>
    %26 = arith.subf %24, %18 : vector<2x768xf32>
    %27 = arith.minimumf %21, %24 : vector<2x768xf32>
    %28 = arith.maximumf %16, %18 : vector<2x768xf32>
    %29 = arith.subf %27, %28 : vector<2x768xf32>
    %cst_3 = arith.constant 0.000000e+00 : f32
    %30 = vector.broadcast %cst_3 : f32 to vector<2x768xf32>
    %31 = arith.maximumf %29, %30 : vector<2x768xf32>
    %32 = vector.extract_strided_slice %25 {offsets = [0, 1], sizes = [2, 767], strides = [1, 1]} : vector<2x768xf32> to vector<2x767xf32>
    %33 = vector.extract_strided_slice %25 {offsets = [0, 0], sizes = [2, 1], strides = [1, 1]} : vector<2x768xf32> to vector<2x1xf32>
    %34 = tpu.concatenate %32, %33 in 1 : vector<2x767xf32>, vector<2x1xf32> -> vector<2x768xf32>
    %35 = arith.mulf %25, %34 : vector<2x768xf32>
    %36 = vector.extract_strided_slice %25 {offsets = [0, 2], sizes = [2, 766], strides = [1, 1]} : vector<2x768xf32> to vector<2x766xf32>
    %37 = vector.extract_strided_slice %25 {offsets = [0, 0], sizes = [2, 2], strides = [1, 1]} : vector<2x768xf32> to vector<2x2xf32>
    %38 = tpu.concatenate %36, %37 in 1 : vector<2x766xf32>, vector<2x2xf32> -> vector<2x768xf32>
    %39 = arith.mulf %35, %38 : vector<2x768xf32>
    %40 = vector.extract_strided_slice %26 {offsets = [0, 1], sizes = [2, 767], strides = [1, 1]} : vector<2x768xf32> to vector<2x767xf32>
    %41 = vector.extract_strided_slice %26 {offsets = [0, 0], sizes = [2, 1], strides = [1, 1]} : vector<2x768xf32> to vector<2x1xf32>
    %42 = tpu.concatenate %40, %41 in 1 : vector<2x767xf32>, vector<2x1xf32> -> vector<2x768xf32>
    %43 = arith.mulf %26, %42 : vector<2x768xf32>
    %44 = vector.extract_strided_slice %26 {offsets = [0, 2], sizes = [2, 766], strides = [1, 1]} : vector<2x768xf32> to vector<2x766xf32>
    %45 = vector.extract_strided_slice %26 {offsets = [0, 0], sizes = [2, 2], strides = [1, 1]} : vector<2x768xf32> to vector<2x2xf32>
    %46 = tpu.concatenate %44, %45 in 1 : vector<2x766xf32>, vector<2x2xf32> -> vector<2x768xf32>
    %47 = arith.mulf %43, %46 : vector<2x768xf32>
    %48 = vector.extract_strided_slice %31 {offsets = [0, 1], sizes = [2, 767], strides = [1, 1]} : vector<2x768xf32> to vector<2x767xf32>
    %49 = vector.extract_strided_slice %31 {offsets = [0, 0], sizes = [2, 1], strides = [1, 1]} : vector<2x768xf32> to vector<2x1xf32>
    %50 = tpu.concatenate %48, %49 in 1 : vector<2x767xf32>, vector<2x1xf32> -> vector<2x768xf32>
    %51 = arith.mulf %31, %50 : vector<2x768xf32>
    %52 = vector.extract_strided_slice %31 {offsets = [0, 2], sizes = [2, 766], strides = [1, 1]} : vector<2x768xf32> to vector<2x766xf32>
    %53 = vector.extract_strided_slice %31 {offsets = [0, 0], sizes = [2, 2], strides = [1, 1]} : vector<2x768xf32> to vector<2x2xf32>
    %54 = tpu.concatenate %52, %53 in 1 : vector<2x766xf32>, vector<2x2xf32> -> vector<2x768xf32>
    %55 = arith.mulf %51, %54 : vector<2x768xf32>
    %56 = arith.addf %39, %47 : vector<2x768xf32>
    %57 = arith.subf %56, %55 : vector<2x768xf32>
    %cst_4 = arith.constant 9.99999997E-7 : f32
    %58 = vector.broadcast %cst_4 : f32 to vector<2x768xf32>
    %59 = arith.maximumf %57, %58 : vector<2x768xf32>
    %60 = arith.divf %55, %59 : vector<2x768xf32>
    %cst_5 = arith.constant 1.000000e+00 : f32
    %61 = vector.broadcast %cst_5 : f32 to vector<2x768xf32>
    %62 = arith.subf %61, %60 : vector<2x768xf32>
    %63 = arith.addi %0, %14 : i32
    %64 = vector.broadcast %63 : i32 to vector<2x768xi32>
    %65 = arith.addi %64, %11 : vector<2x768xi32>
    %c2_i32_6 = arith.constant 2 : i32
    %66 = vector.broadcast %c2_i32_6 : i32 to vector<2x768xi32>
    %67 = arith.cmpi slt, %65, %66 : vector<2x768xi32>
    %68 = arith.andi %10, %67 : vector<2x768xi1>
    %cst_7 = arith.constant 0.000000e+00 : f32
    %69 = vector.broadcast %cst_7 : f32 to vector<2x768xf32>
    %70 = arith.select %68, %62, %69 : vector<2x768xi1>, vector<2x768xf32>
    %71 = arith.addf %12, %70 : vector<2x768xf32>
    %c1_i32 = arith.constant 1 : i32
    %72 = vector.extract_strided_slice %71 {offsets = [0, 0], sizes = [2, 128], strides = [1, 1]} : vector<2x768xf32> to vector<2x128xf32>
    %73 = vector.extract_strided_slice %71 {offsets = [0, 128], sizes = [2, 128], strides = [1, 1]} : vector<2x768xf32> to vector<2x128xf32>
    %74 = arith.addf %72, %73 : vector<2x128xf32>
    %75 = vector.extract_strided_slice %71 {offsets = [0, 256], sizes = [2, 128], strides = [1, 1]} : vector<2x768xf32> to vector<2x128xf32>
    %76 = arith.addf %74, %75 : vector<2x128xf32>
    %77 = vector.extract_strided_slice %71 {offsets = [0, 384], sizes = [2, 128], strides = [1, 1]} : vector<2x768xf32> to vector<2x128xf32>
    %78 = arith.addf %76, %77 : vector<2x128xf32>
    %79 = vector.extract_strided_slice %71 {offsets = [0, 512], sizes = [2, 128], strides = [1, 1]} : vector<2x768xf32> to vector<2x128xf32>
    %80 = arith.addf %78, %79 : vector<2x128xf32>
    %81 = vector.extract_strided_slice %71 {offsets = [0, 640], sizes = [2, 128], strides = [1, 1]} : vector<2x768xf32> to vector<2x128xf32>
    %82 = arith.addf %80, %81 : vector<2x128xf32>
    %c0_8 = arith.constant 0 : index
    %c0_9 = arith.constant 0 : index
    %83 = vector.load %arg3[%c0_8, %c0_9] : memref<2x128xf32, #tpu.memory_space<vmem>>, vector<2x128xf32>
    tpu.vector_store %arg3[%c0_8, %c0_9], %82 {strides = array<i32>} : memref<2x128xf32, #tpu.memory_space<vmem>>, vector<2x128xf32>,
    return
  }
  func.func @transform_0(%arg0: i32) -> (i32, i32) {
    %c0_i32 = arith.constant 0 : i32
    %c0_i32_0 = arith.constant 0 : i32
    return %arg0, %c0_i32 : i32, i32
  }
  func.func @transform_1(%arg0: i32) -> (i32, i32) {
    %c0_i32 = arith.constant 0 : i32
    %c0_i32_0 = arith.constant 0 : i32
    return %arg0, %c0_i32 : i32, i32
  }
  func.func @transform_2(%arg0: i32) -> (i32, i32) {
    %c0_i32 = arith.constant 0 : i32
    %c0_i32_0 = arith.constant 0 : i32
    return %arg0, %c0_i32 : i32, i32
  }
}

</mosaic_0001>

<bundles_post_ra>
// kernel: tpu_custom_call.1
= control target key start
LH: loop header
LB: loop body
LE: loop exit
PB: predicated region body
PF: predicated region fallthrough
CT: control target
= control target key end

     0   :  { %7 = vsyncpa [#allocation3], 0  ;;  %s1047_s0 = inlined_call_operand.hbm [shape: f32[2,768], index: 0, kind: input, shape index: {}]   ;;  %s1048_s1 = inlined_call_operand.hbm [shape: f32[2,768], index: 1, kind: input, shape index: {}]   ;;  %s1049_s2 = inlined_call_operand.hbm [shape: f32[2,128], index: 2, kind: output, shape index: {}]  }
   0x1   :  { %8 = vsyncpa [#allocation6], 0 }
   0x2   :  { %9 = vsyncpa [#allocation4], 0  ;;  %s646_s9 = smov [#allocation2]   ;;  %s647_s11 = smov [#allocation5]  }
   0x3   :  { %s16_s10 = sshll.u32 %s646_s9, 4  ;;  %s26_s12 = sshll.u32 %s647_s11, 4  ;;  %s17_s10 = int_to_ptr.vmem [resolvable:$true] %s16_s10  ;;  %s27_s12 = int_to_ptr.vmem [resolvable:$true] %s26_s12 }
   0x4   :  { %s574_s15 = scalar_lea.hbm %s1047_s0, 192 }
   0x5   :  { %p575_p0 = scmp.ne.s32.totalorder %s1047_s0, %s574_s15  ;;  %p578_p1 = scmp.lt.u32.totalorder %s574_s15, %s1047_s0 }
   0x7   :  { %p580_p2 = pnand %p578_p1, %p575_p0 }
   0x9   :  { %583 = shalt.err (!%p580_p2)
}
   0xa   :  { %s584_s20 = scalar_lea.vmem %s17_s10, 192  ;;  %p589_p4 = scmp.lt.s32.totalorder %s17_s10, %s17_s10 }
   0xb   :  { %p585_p3 = scmp.ne.s32.totalorder %s17_s10, %s584_s20  ;;  %p590_p5 = scmp.lt.s32.totalorder %s584_s20, %s584_s20 }
   0xd   :  { %p591_p6 = por %p590_p5, %p589_p4 }
   0xf   :  { %p592_p7 = pnand %p591_p6, %p585_p3 }
  0x11   :  { %595 = shalt.err (!%p592_p7)
}
  0x12   :  { %19 = dma.hbm_to_vmem [thread:$0]  %s1047_s0, 192, %s17_s10, [#allocation3]  }
  0x13   :  { %s596_s25 = scalar_lea.hbm %s1048_s1, 192 }
  0x14   :  { %p597_p8 = scmp.ne.s32.totalorder %s1048_s1, %s596_s25  ;;  %p600_p9 = scmp.lt.u32.totalorder %s596_s25, %s1048_s1 }
  0x16   :  { %p602_p10 = pnand %p600_p9, %p597_p8 }
  0x18   :  { %605 = shalt.err (!%p602_p10)
}
  0x19   :  { %s606_s30 = scalar_lea.vmem %s27_s12, 192  ;;  %p611_p12 = scmp.lt.s32.totalorder %s27_s12, %s27_s12 }
  0x1a   :  { %p607_p11 = scmp.ne.s32.totalorder %s27_s12, %s606_s30  ;;  %p612_p13 = scmp.lt.s32.totalorder %s606_s30, %s606_s30 }
  0x1c   :  { %p613_p0 = por %p612_p13, %p611_p12 }
  0x1e   :  { %p614_p1 = pnand %p613_p0, %p607_p11 }
  0x20   :  { %617 = shalt.err (!%p614_p1)
}
  0x21   :  { %29 = dma.hbm_to_vmem [thread:$0]  %s1048_s1, 192, %s27_s12, [#allocation6]  }
  0x22   :  { %640 = dma.done.wait [#allocation3], 192  }
  0x23   :  { %641 = vsyncadd [#allocation3], 4294967104 }
  0x24   :  { %642 = dma.done.wait [#allocation6], 192  }
  0x25   :  { %643 = vsyncadd [#allocation6], 4294967104  ;;  %v37_v0 = vlaneseq  ;;  %v648_v1 = vmov 1983009808   ;;  %v79_v6 = vld [vmem:[#allocation2] sm:$0xff]  ;;  %v83_v7 = vld [vmem:[#allocation5] sm:$0xff] }
  0x26   :  { %v89_v2 = vunpack.c.l.s4 %v648_v1  ;;  %v87_v9 = vcombine.high %v79_v6, %v79_v6  ;;  %v80_v11 = vld [vmem:[#allocation2 + $0x8] sm:$0xf]  ;;  %v84_v12 = vld [vmem:[#allocation5 + $0x8] sm:$0xf]  ;;  %v220_v14 = vmax.f32 %v79_v6, %v83_v7  ;;  %s649_s1 = smov 125   ;;  %v140_v19 = vcombine.high %v83_v7, %v83_v7  ;;  %s650_s4 = smov 127  }
  0x27   :  { %v693_v3 = vshrl.u32 %v37_v0, 7  ;;  %v221_v13 = vmax.f32 %v80_v11, %v84_v12  ;;  %vm124_vm0 = vcmask 1022976   ;;  %s651_s5 = smov 126   ;;  %vm285_vm1 = vcmask 1039360   ;;  %s652_s6 = smov [#allocation7]  }
  0x28   :  { %v90_v4 = vunpack.c.0.s8 %v89_v2  ;;  %v224_v17 = vcombine.high %v220_v14, %v220_v14  ;;  %vm317_vm2 = vcmask 1031168   ;;  %s543_s7 = sshll.u32 %s652_s6, 4  ;;  %s544_s7 = int_to_ptr.vmem [resolvable:$true] %s543_s7 }
  0x29   :  { %1054 = vst [vmem:[#allocation11_spill] sm:$0xff] %v693_v3  ;;  %s618_s8 = scalar_lea.vmem %s544_s7, 32  ;;  %p623_p3 = scmp.lt.s32.totalorder %s544_s7, %s544_s7 }
  0x2a   :  { %v93_v5 = vsub.s32 %v90_v4, %v693_v3  ;;  %p619_p2 = scmp.ne.s32.totalorder %s544_s7, %s618_s8  ;;  %p624_p4 = scmp.lt.s32.totalorder %s618_s8, %s618_s8 }
  0x2c   :  { %v94_v8 = vrot.slane %v79_v6, %v93_v5  ;;  %v147_v10 = vrot.slane %v83_v7, %v93_v5  ;;  %v696_v15 = vrot.slane %v87_v9, %v93_v5  ;;  %v698_v16 = vrot.slane %v220_v14, %v93_v5  ;;  %p625_p5 = por %p624_p4, %p623_p3 }
  0x2d   :  { %v701_v20 = vrot.slane %v224_v17, %v93_v5  ;;  %v707_v23 = vrot.slane %v140_v19, %v93_v5  ;;  %v709_v24 = vrot.slane %v221_v13, %v93_v5  ;;  %v110_v26 = vrot.slane %v80_v11, %v93_v5 }
  0x2e   :  { %112 = vrot.lane.b32.xlu0 %v94_v8, %s649_s1  ;;  %116 = vrot.lane.b32.xlu1 %v696_v15, %s649_s1  ;;  %v155_v18 = vcombine.high %v147_v10, %v147_v10  ;;  %v102_v21 = vcombine.high %v94_v8, %v94_v8  ;;  %v705_v22 = vcombine.high %v696_v15, %v696_v15  ;;  %p626_p6 = pnand %p625_p5, %p619_p2 }
  0x2f   :  { %v714_v25 = vcombine.high %v707_v23, %v707_v23  ;;  %v163_v27 = vrot.slane %v84_v12, %v93_v5  ;;  %v111_v28 = vcombine.high %v110_v26, %v110_v26  ;;  %v239_v6 = vcombine.high %v698_v16, %v698_v16 }
  0x31   :  { %v164_v29 = vcombine.high %v163_v27, %v163_v27 }
  0x32   :  { %165 = vrot.lane.b32.xlu0 %v147_v10, %s649_s1  ;;  %167 = vrot.lane.b32.xlu1 %v155_v18, %s649_s1 }
  0x36   :  { %114 = vrot.lane.b32.xlu0 %v102_v21, %s649_s1  ;;  %118 = vrot.lane.b32.xlu1 %v705_v22, %s649_s1 }
  0x3a   :  { %169 = vrot.lane.b32.xlu0 %v707_v23, %s649_s1  ;;  %171 = vrot.lane.b32.xlu1 %v714_v25, %s649_s1 }
  0x3e   :  { %120 = vrot.lane.b32.xlu0 %v110_v26, %s649_s1  ;;  %173 = vrot.lane.b32.xlu1 %v163_v27, %s649_s1 }
  0x42   :  { %122 = vrot.lane.b32.xlu0 %v111_v28, %s649_s1  ;;  %175 = vrot.lane.b32.xlu1 %v164_v29, %s649_s1 }
  0xa0   :  { %v113_v30 = vpop.permute.xlu0 %112  ;;  %v117_v31 = vpop.permute.xlu1 %116 }
  0xa4   :  { %v166_v32 = vpop.permute.xlu0 %165  ;;  %v168_v33 = vpop.permute.xlu1 %167 }
  0xa5   :  { %v177_v40 = vsel %vm124_vm0, %v166_v32, %v168_v33 }
  0xa6   :  { %v730_v43 = vsub.f32 %v177_v40, %v147_v10 }
  0xa8   :  { %v115_v34 = vpop.permute.xlu0 %114  ;;  %v119_v39 = vpop.permute.xlu1 %118 }
  0xa9   :  { %v125_v35 = vsel %vm124_vm0, %v113_v30, %v115_v34  ;;  %v126_v36 = vsel %vm124_vm0, %v115_v34, %v117_v31  ;;  %v127_v57 = vsel %vm124_vm0, %v117_v31, %v119_v39 }
  0xaa   :  { %v720_v37 = vsub.f32 %v125_v35, %v94_v8  ;;  %v722_v38 = vsub.f32 %v126_v36, %v102_v21  ;;  %v772_v59 = vsub.f32 %v127_v57, %v696_v15  ;;  %v214_v4 = vmin.f32 %v125_v35, %v177_v40 }
  0xac   :  { %273 = vrot.lane.b32.xlu0 %v720_v37, %s650_s4  ;;  %v170_v41 = vpop.permute.xlu0 %169  ;;  %275 = vrot.lane.b32.xlu1 %v722_v38, %s650_s4  ;;  %v172_v45 = vpop.permute.xlu1 %171  ;;  %v255_v7 = vsub.f32 %v214_v4, %v698_v16  ;;  %v240_v16 = vcombine.high %v701_v20, %v701_v20 }
  0xad   :  { %v178_v42 = vsel %vm124_vm0, %v168_v33, %v170_v41  ;;  %v179_v62 = vsel %vm124_vm0, %v170_v41, %v172_v45 }
  0xae   :  { %v732_v44 = vsub.f32 %v178_v42, %v155_v18  ;;  %v792_v2 = vsub.f32 %v179_v62, %v707_v23  ;;  %v215_v5 = vmin.f32 %v126_v36, %v178_v42  ;;  %v216_v9 = vmin.f32 %v127_v57, %v179_v62 }
  0xaf   :  { %v809_v10 = vmax.f32 %v255_v7, 0.0 }
  0xb0   :  { %v121_v46 = vpop.permute.xlu0 %120  ;;  %345 = vrot.lane.b32.xlu0 %v732_v44, %s650_s4  ;;  %343 = vrot.lane.b32.xlu1 %v730_v43, %s650_s4  ;;  %v174_v47 = vpop.permute.xlu1 %173  ;;  %v256_v8 = vsub.f32 %v215_v5, %v239_v6  ;;  %v257_v13 = vsub.f32 %v216_v9, %v701_v20 }
  0xb1   :  { %v128_v60 = vsel %vm124_vm0, %v119_v39, %v121_v46  ;;  %v180_v63 = vsel %vm124_vm0, %v172_v45, %v174_v47 }
  0xb2   :  { %v780_v61 = vsub.f32 %v128_v60, %v705_v22  ;;  %v789_v1 = vsub.f32 %v180_v63, %v714_v25  ;;  %v811_v12 = vmax.f32 %v256_v8, 0.0  ;;  %v217_v14 = vmin.f32 %v128_v60, %v180_v63 }
  0xb3   :  { %v825_v17 = vmax.f32 %v257_v13, 0.0  ;;  %v248_v22 = vcombine.high %v709_v24, %v709_v24 }
  0xb4   :  { %v123_v48 = vpop.permute.xlu0 %122  ;;  %307 = vrot.lane.b32.xlu0 %v722_v38, %s651_s5  ;;  %305 = vrot.lane.b32.xlu1 %v720_v37, %s651_s5  ;;  %v176_v51 = vpop.permute.xlu1 %175  ;;  %v258_v21 = vsub.f32 %v217_v14, %v240_v16 }
  0xb5   :  { %v129_v49 = vsel %vm124_vm0, %v121_v46, %v123_v48  ;;  %v181_v52 = vsel %vm124_vm0, %v174_v47, %v176_v51  ;;  %v189_v54 = vsel %vm124_vm0, %v176_v51, %v166_v32  ;;  %v137_v55 = vsel %vm124_vm0, %v123_v48, %v113_v30 }
  0xb6   :  { %v747_v50 = vsub.f32 %v129_v49, %v110_v26  ;;  %v754_v53 = vsub.f32 %v181_v52, %v163_v27  ;;  %v762_v56 = vsub.f32 %v189_v54, %v164_v29  ;;  %v765_v58 = vsub.f32 %v137_v55, %v111_v28 }
  0xb7   :  { %v218_v11 = vmin.f32 %v129_v49, %v181_v52  ;;  %v219_v18 = vmin.f32 %v137_v55, %v189_v54  ;;  %v835_v20 = vmax.f32 %v258_v21, 0.0  ;;  %v874_v49 = vand.u32 127, %v37_v0 }
  0xb8   :  { %376 = vrot.lane.b32.xlu0 %v732_v44, %s651_s5  ;;  %374 = vrot.lane.b32.xlu1 %v730_v43, %s651_s5 }
  0xb9   :  { %v259_v15 = vsub.f32 %v218_v11, %v709_v24  ;;  %v260_v23 = vsub.f32 %v219_v18, %v248_v22  ;;  %1055 = vst [vmem:[#allocation12_spill] sm:$0xff] %v874_v49  ;;  %v877_v51 = vadd.s32 128, %v874_v49  ;;  %v889_v62 = vadd.s32 256, %v874_v49 }
  0xba   :  { %v44_v6 = vmul.u32 10923, %v874_v49  ;;  %v905_v13 = vadd.s32 384, %v874_v49  ;;  %v908_v14 = vadd.s32 512, %v874_v49 }
  0xbb   :  { %v827_v19 = vmax.f32 %v259_v15, 0.0  ;;  %v841_v25 = vmax.f32 %v260_v23, 0.0  ;;  %v45_v55 = vmul.u32 10923, %v877_v51  ;;  %1056 = vst [vmem:[#allocation13_spill] sm:$0xff] %v889_v62  ;;  %v46_v11 = vmul.u32 10923, %v889_v62 }
  0xbc   :  { %313 = vrot.lane.b32.xlu0 %v747_v50, %s651_s5  ;;  %281 = vrot.lane.b32.xlu1 %v747_v50, %s650_s4  ;;  %v915_v23 = vshra.s32 %v44_v6, 16 }
  0xbd   :  { %v896_v7 = vshra.s32 %v45_v55, 16  ;;  %v920_v3 = vshra.s32 %v46_v11, 16 }
  0xc0   :  { %382 = vrot.lane.b32.xlu0 %v754_v53, %s651_s5  ;;  %351 = vrot.lane.b32.xlu1 %v754_v53, %s650_s4 }
  0xc4   :  { %384 = vrot.lane.b32.xlu0 %v762_v56, %s651_s5  ;;  %283 = vrot.lane.b32.xlu1 %v765_v58, %s650_s4 }
  0xc8   :  { %277 = vrot.lane.b32.xlu0 %v772_v59, %s650_s4  ;;  %353 = vrot.lane.b32.xlu1 %v762_v56, %s650_s4 }
  0xcc   :  { %279 = vrot.lane.b32.xlu0 %v780_v61, %s650_s4  ;;  %315 = vrot.lane.b32.xlu1 %v765_v58, %s651_s5 }
  0xd0   :  { %349 = vrot.lane.b32.xlu0 %v789_v1, %s650_s4  ;;  %347 = vrot.lane.b32.xlu1 %v792_v2, %s650_s4 }
  0xd4   :  { %311 = vrot.lane.b32.xlu0 %v780_v61, %s651_s5  ;;  %309 = vrot.lane.b32.xlu1 %v772_v59, %s651_s5 }
  0xd8   :  { %380 = vrot.lane.b32.xlu0 %v789_v1, %s651_s5  ;;  %378 = vrot.lane.b32.xlu1 %v792_v2, %s651_s5 }
  0xdc   :  { %411 = vrot.lane.b32.xlu0 %v809_v10, %s650_s4  ;;  %413 = vrot.lane.b32.xlu1 %v811_v12, %s650_s4 }
  0xe0   :  { %442 = vrot.lane.b32.xlu0 %v809_v10, %s651_s5  ;;  %444 = vrot.lane.b32.xlu1 %v811_v12, %s651_s5 }
  0xe4   :  { %415 = vrot.lane.b32.xlu0 %v825_v17, %s650_s4  ;;  %419 = vrot.lane.b32.xlu1 %v827_v19, %s650_s4 }
  0xe8   :  { %446 = vrot.lane.b32.xlu0 %v825_v17, %s651_s5  ;;  %417 = vrot.lane.b32.xlu1 %v835_v20, %s650_s4 }
  0xec   :  { %448 = vrot.lane.b32.xlu0 %v835_v20, %s651_s5  ;;  %421 = vrot.lane.b32.xlu1 %v841_v25, %s650_s4 }
  0xf0   :  { %450 = vrot.lane.b32.xlu0 %v827_v19, %s651_s5  ;;  %452 = vrot.lane.b32.xlu1 %v841_v25, %s651_s5 }
 0x11e   :  { %v274_v24 = vpop.permute.xlu0 %273  ;;  %v851_v26 = vpop.permute.xlu1 %275 }
 0x11f   :  { %v286_v63 = vsel %vm285_vm1, %v274_v24, %v851_v26 }
 0x122   :  { %v346_v27 = vpop.permute.xlu0 %345  ;;  %v853_v28 = vpop.permute.xlu1 %343 }
 0x123   :  { %v355_v57 = vsel %vm285_vm1, %v853_v28, %v346_v27 }
 0x124   :  { %v368_v5 = vmul.f32 %v355_v57, %v730_v43  ;;  %v299_v43 = vmul.f32 %v286_v63, %v720_v37  ;;  %v924_v37 = vadd.s32 640, %v874_v49  ;;  %v48_v63 = vmul.u32 10923, %v908_v14 }
 0x126   :  { %v855_v29 = vpop.permute.xlu0 %307  ;;  %v857_v30 = vpop.permute.xlu1 %305 }
 0x127   :  { %v318_v8 = vsel %vm317_vm2, %v857_v30, %v855_v29 }
 0x128   :  { %v331_v21 = vmul.f32 %v318_v8, %v299_v43 }
 0x12a   :  { %v377_v31 = vpop.permute.xlu0 %376  ;;  %v375_v32 = vpop.permute.xlu1 %374 }
 0x12b   :  { %v386_v4 = vsel %vm317_vm2, %v375_v32, %v377_v31 }
 0x12c   :  { %v399_v15 = vmul.f32 %v386_v4, %v368_v5 }
 0x12e   :  { %v859_v33 = vpop.permute.xlu0 %313  ;;  %v861_v34 = vpop.permute.xlu1 %281  ;;  %v473_v4 = vadd.f32 %v399_v15, %v331_v21 }
 0x132   :  { %v863_v35 = vpop.permute.xlu0 %382  ;;  %v865_v36 = vpop.permute.xlu1 %351 }
 0x136   :  { %v385_v39 = vpop.permute.xlu0 %384  ;;  %v284_v40 = vpop.permute.xlu1 %283 }
 0x137   :  { %v290_v22 = vsel %vm285_vm1, %v861_v34, %v284_v40  ;;  %v298_v5 = vsel %vm285_vm1, %v284_v40, %v274_v24  ;;  %v390_v55 = vsel %vm317_vm2, %v863_v35, %v385_v39  ;;  %v398_v11 = vsel %vm317_vm2, %v385_v39, %v375_v32 }
 0x138   :  { %v303_v62 = vmul.f32 %v290_v22, %v747_v50  ;;  %v304_v40 = vmul.f32 %v298_v5, %v765_v58 }
 0x13a   :  { %v278_v41 = vpop.permute.xlu0 %277  ;;  %v354_v42 = vpop.permute.xlu1 %353 }
 0x13b   :  { %v287_v15 = vsel %vm285_vm1, %v851_v26, %v278_v41  ;;  %v359_v24 = vsel %vm285_vm1, %v865_v36, %v354_v42  ;;  %v367_v32 = vsel %vm285_vm1, %v354_v42, %v853_v28 }
 0x13c   :  { %v300_v28 = vmul.f32 %v287_v15, %v722_v38  ;;  %v372_v42 = vmul.f32 %v359_v24, %v754_v53  ;;  %v373_v22 = vmul.f32 %v367_v32, %v762_v56 }
 0x13e   :  { %v867_v45 = vpop.permute.xlu0 %279  ;;  %v869_v46 = vpop.permute.xlu1 %315 }
 0x13f   :  { %v288_v26 = vsel %vm285_vm1, %v278_v41, %v867_v45  ;;  %v289_v41 = vsel %vm285_vm1, %v867_v45, %v861_v34 }
 0x140   :  { %v301_v38 = vmul.f32 %v288_v26, %v772_v59 }
 0x142   :  { %v871_v47 = vpop.permute.xlu0 %349  ;;  %v348_v48 = vpop.permute.xlu1 %347 }
 0x143   :  { %v356_v8 = vsel %vm285_vm1, %v346_v27, %v348_v48  ;;  %v357_v50 = vsel %vm285_vm1, %v348_v48, %v871_v47 }
 0x144   :  { %v369_v39 = vmul.f32 %v356_v8, %v732_v44 }
 0x146   :  { %v879_v52 = vpop.permute.xlu0 %311  ;;  %v881_v54 = vpop.permute.xlu1 %309 }
 0x147   :  { %v320_v53 = vsel %vm317_vm2, %v881_v54, %v879_v52 }
 0x14a   :  { %v886_v60 = vpop.permute.xlu0 %380  ;;  %v379_v0 = vpop.permute.xlu1 %378 }
 0x14b   :  { %v387_v27 = vsel %vm317_vm2, %v377_v31, %v379_v0  ;;  %v319_v31 = vsel %vm317_vm2, %v855_v29, %v881_v54  ;;  %v388_v44 = vsel %vm317_vm2, %v379_v0, %v886_v60  ;;  %v358_v29 = vsel %vm285_vm1, %v871_v47, %v865_v36 }
 0x14c   :  { %v400_v48 = vmul.f32 %v387_v27, %v369_v39  ;;  %v332_v0 = vmul.f32 %v319_v31, %v300_v28  ;;  %v389_v34 = vsel %vm317_vm2, %v886_v60, %v863_v35  ;;  %v330_v35 = vsel %vm317_vm2, %v869_v46, %v857_v30 }
 0x14d   :  { %v333_v60 = vmul.f32 %v320_v53, %v301_v38  ;;  %v336_v31 = vmul.f32 %v330_v35, %v304_v40  ;;  %v1057_v53 = vmul.u32 10923, %v905_v13 }
 0x14e   :  { %v901_v9 = vpop.permute.xlu0 %411  ;;  %v414_v16 = vpop.permute.xlu1 %413  ;;  %v474_v59 = vadd.f32 %v400_v48, %v332_v0 }
 0x14f   :  { %v423_v18 = vsel %vm285_vm1, %v901_v9, %v414_v16  ;;  %v53_v0 = vshra.s32 %v1057_v53, 16 }
 0x150   :  { %v436_v6 = vmul.f32 %v423_v18, %v809_v10 }
 0x152   :  { %v918_v57 = vpop.permute.xlu0 %442  ;;  %v445_v43 = vpop.permute.xlu1 %444 }
 0x153   :  { %v454_v49 = vsel %vm317_vm2, %v918_v57, %v445_v43 }
 0x154   :  { %v941_v10 = vmul.f32 %v454_v49, %v436_v6  ;;  %v302_v6 = vmul.f32 %v289_v41, %v780_v61 }
 0x156   :  { %v416_v18 = vpop.permute.xlu0 %415  ;;  %v479_v49 = vsub.f32 %v473_v4, %v941_v10  ;;  %v420_v21 = vpop.permute.xlu1 %419 }
 0x157   :  { %v424_v58 = vsel %vm285_vm1, %v414_v16, %v416_v18  ;;  %v370_v16 = vmul.f32 %v357_v50, %v792_v2  ;;  %v371_v2 = vmul.f32 %v358_v29, %v789_v1  ;;  %v321_v1 = vsel %vm317_vm2, %v879_v52, %v859_v33 }
 0x158   :  { %v437_v4 = vmul.f32 %v424_v58, %v811_v12  ;;  %v485_v5 = vmax.f32 %v479_v49, 1e-06  ;;  %v322_v12 = vsel %vm317_vm2, %v859_v33, %v869_v46  ;;  %v403_v52 = vmul.f32 %v390_v55, %v372_v42 }
 0x159   :  { %v401_v45 = vmul.f32 %v388_v44, %v370_v16  ;;  %v335_v26 = vmul.f32 %v322_v12, %v303_v62  ;;  %v334_v49 = vmul.f32 %v321_v1, %v302_v6  ;;  %v59_v12 = vmul.u32 6, %v53_v0 }
 0x15a   :  { %v447_v56 = vpop.permute.xlu0 %446  ;;  %v418_v47 = vpop.permute.xlu1 %417  ;;  %562 = vrcp.f32 %v485_v5 }
 0x15b   :  { %v455_v36 = vsel %vm317_vm2, %v445_v43, %v447_v56  ;;  %v425_v54 = vsel %vm285_vm1, %v416_v18, %v418_v47  ;;  %v402_v43 = vmul.f32 %v389_v34, %v371_v2  ;;  %v475_v61 = vadd.f32 %v401_v45, %v333_v60 }
 0x15c   :  { %v978_v8 = vmul.f32 %v455_v36, %v437_v4  ;;  %v438_v24 = vmul.f32 %v425_v54, %v825_v17  ;;  %v426_v32 = vsel %vm285_vm1, %v418_v47, %v420_v21  ;;  %v404_v17 = vmul.f32 %v398_v11, %v373_v22  ;;  %v1060_v54 = vld [vmem:[#allocation13_spill] sm:$0xff] }
 0x15d   :  { %v439_v58 = vmul.f32 %v426_v32, %v835_v20  ;;  %v476_v48 = vadd.f32 %v402_v43, %v334_v49  ;;  %v477_v11 = vadd.f32 %v403_v52, %v335_v26  ;;  %v56_v22 = vmul.u32 6, %v915_v23  ;;  %v1059_v23 = vld [vmem:[#allocation12_spill] sm:$0xff]  ;;  %v1061_v43 = vld [vmem:[#allocation11_spill] sm:$0xff] }
 0x15e   :  { %v480_v15 = vsub.f32 %v474_v59, %v978_v8  ;;  %v449_v27 = vpop.permute.xlu0 %448  ;;  %v422_v39 = vpop.permute.xlu1 %421  ;;  %v478_v40 = vadd.f32 %v404_v17, %v336_v31  ;;  %v49_v34 = vmul.u32 10923, %v924_v37  ;;  %vm512_vm5 = vcmp.lt.s32.totalorder %v1061_v43, 2 }
 0x15f   :  { %v456_v50 = vsel %vm317_vm2, %v447_v56, %v449_v27  ;;  %v427_v46 = vsel %vm285_vm1, %v420_v21, %v422_v39  ;;  %v435_v33 = vsel %vm285_vm1, %v422_v39, %v901_v9  ;;  %v62_v59 = vsub.s32 %v1059_v23, %v56_v22 }
 0x160   :  { %v486_v18 = vmax.f32 %v480_v15, 1e-06  ;;  %v469_v30 = vmul.f32 %v456_v50, %v438_v24  ;;  %v440_v41 = vmul.f32 %v427_v46, %v827_v19  ;;  %v441_v29 = vmul.f32 %v435_v33, %v841_v25 }
 0x161   :  { %v58_v19 = vmul.u32 6, %v920_v3  ;;  %v54_v3 = vshra.s32 %v48_v63, 16  ;;  %v55_v35 = vshra.s32 %v49_v34, 16  ;;  %vm68_vm4 = vcmp.eq.s32.totalorder %v62_v59, 0 }
 0x162   :  { %564 = vrcp.f32 %v486_v18  ;;  %v481_v28 = vsub.f32 %v475_v61, %v469_v30  ;;  %v451_v44 = vpop.permute.xlu0 %450  ;;  %v453_v16 = vpop.permute.xlu1 %452  ;;  %v65_v15 = vsub.s32 %v905_v13, %v59_v12  ;;  %vm513_vm8 = vmand %vm68_vm4, %vm512_vm5 }
 0x163   :  { %v457_v21 = vsel %vm317_vm2, %v449_v27, %v451_v44  ;;  %v458_v62 = vsel %vm317_vm2, %v451_v44, %v453_v16  ;;  %v466_v55 = vsel %vm317_vm2, %v453_v16, %v918_v57  ;;  %v1058_v57 = vmul.u32 6, %v896_v7 }
 0x164   :  { %v487_v38 = vmax.f32 %v481_v28, 1e-06  ;;  %v470_v9 = vmul.f32 %v457_v21, %v439_v58  ;;  %v471_v20 = vmul.f32 %v458_v62, %v440_v41  ;;  %v472_v42 = vmul.f32 %v466_v55, %v441_v29  ;;  %v563_v5 = vpop.eup %562 }
 0x165   :  { %v63_v36 = vsub.s32 %v877_v51, %v1058_v57  ;;  %v64_v6 = vsub.s32 %v1060_v54, %v58_v19  ;;  %v492_v1 = vmul.f32 %v563_v5, %v941_v10  ;;  %v60_v7 = vmul.u32 6, %v54_v3 }
 0x166   :  { %566 = vrcp.f32 %v487_v38  ;;  %v482_v25 = vsub.f32 %v476_v48, %v470_v9  ;;  %v483_v4 = vsub.f32 %v477_v11, %v471_v20  ;;  %v484_v56 = vsub.f32 %v478_v40, %v472_v42 }
 0x167   :  { %vm69_vm3 = vcmp.eq.s32.totalorder %v63_v36, 0  ;;  %vm70_vm6 = vcmp.eq.s32.totalorder %v64_v6, 0  ;;  %v61_v24 = vmul.u32 6, %v55_v35  ;;  %v503_v10 = vsub.f32 1.0, %v492_v1 }
 0x168   :  { %v488_v45 = vmax.f32 %v482_v25, 1e-06  ;;  %v489_v47 = vmax.f32 %v483_v4, 1e-06  ;;  %v490_v2 = vmax.f32 %v484_v56, 1e-06  ;;  %vm514_vm7 = vmand %vm69_vm3, %vm512_vm5 }
 0x169   :  { %vm515_vm9 = vmand %vm70_vm6, %vm512_vm5  ;;  %vm71_vm10 = vcmp.eq.s32.totalorder %v65_v15, 0  ;;  %v67_v13 = vsub.s32 %v924_v37, %v61_v24  ;;  %v519_v46 = vsel %vm513_vm8, %v503_v10, 0.0 }
 0x16a   :  { %568 = vrcp.f32 %v488_v45  ;;  %vm516_vm12 = vmand %vm71_vm10, %vm512_vm5 }
 0x16b   :  { %570 = vrcp.f32 %v489_v47  ;;  %vm73_vm13 = vcmp.eq.s32.totalorder %v67_v13, 0 }
 0x16c   :  { %v565_v60 = vpop.eup %564  ;;  %572 = vrcp.f32 %v490_v2  ;;  %vm518_vm15 = vmand %vm73_vm13, %vm512_vm5 }
 0x16d   :  { %v494_v51 = vmul.f32 %v565_v60, %v978_v8  ;;  %v66_v8 = vsub.s32 %v908_v14, %v60_v7 }
 0x16f   :  { %v504_v63 = vsub.f32 1.0, %v494_v51  ;;  %vm72_vm11 = vcmp.eq.s32.totalorder %v66_v8, 0 }
 0x170   :  { %v567_v27 = vpop.eup %566  ;;  %vm517_vm14 = vmand %vm72_vm11, %vm512_vm5 }
 0x171   :  { %v496_v61 = vmul.f32 %v567_v27, %v469_v30  ;;  %v520_v32 = vsel %vm514_vm7, %v504_v63, 0.0 }
 0x172   :  { %v531_v31 = vadd.f32 %v520_v32, %v519_v46 }
 0x173   :  { %v505_v50 = vsub.f32 1.0, %v496_v61 }
 0x174   :  { %v569_v39 = vpop.eup %568 }
 0x175   :  { %v571_v18 = vpop.eup %570  ;;  %v521_v33 = vsel %vm515_vm9, %v505_v50, 0.0  ;;  %v498_v52 = vmul.f32 %v569_v39, %v470_v9 }
 0x176   :  { %v573_v26 = vpop.eup %572  ;;  %v500_v14 = vmul.f32 %v571_v18, %v471_v20  ;;  %v532_v17 = vadd.f32 %v531_v31, %v521_v33 }
 0x177   :  { %v506_v30 = vsub.f32 1.0, %v498_v52  ;;  %v502_v49 = vmul.f32 %v573_v26, %v472_v42 }
 0x178   :  { %v507_v58 = vsub.f32 1.0, %v500_v14 }
 0x179   :  { %v522_v37 = vsel %vm516_vm12, %v506_v30, 0.0  ;;  %v508_v28 = vsub.f32 1.0, %v502_v49 }
 0x17a   :  { %v533_v44 = vadd.f32 %v532_v17, %v522_v37  ;;  %v523_v48 = vsel %vm517_vm14, %v507_v58, 0.0 }
 0x17b   :  { %v524_v29 = vsel %vm518_vm15, %v508_v28, 0.0 }
 0x17c   :  { %v534_v41 = vadd.f32 %v533_v44, %v523_v48 }
 0x17e   :  { %v535_v21 = vadd.f32 %v534_v41, %v524_v29 }
 0x180   :  { %536 = vst [vmem:[#allocation7] sm:$0x3] %v535_v21 }
 0x181   :  { %629 = shalt.err (!%p626_p6)
}
 0x182   :  { %s630_s11 = scalar_lea.hbm %s1049_s2, 32 }
 0x183   :  { %p631_p7 = scmp.ne.s32.totalorder %s1049_s2, %s630_s11  ;;  %p634_p8 = scmp.lt.u32.totalorder %s630_s11, %s1049_s2 }
 0x185   :  { %p636_p9 = pnand %p634_p8, %p631_p7 }
 0x187   :  { %639 = shalt.err (!%p636_p9)
}
 0x188   :  { %546 = dma.vmem_to_hbm [thread:$0]  %s544_s7, 32, %s1049_s2, [#allocation4]  }
 0x189   :  { %644 = dma.done.wait [#allocation4], 32  }
 0x18a   :  { %645 = vsyncadd [#allocation4], 4294967264 }
 0x18b   :  { %550 = vsyncpa [#allocation3], 1 }
 0x18c   :  { %551 = vsyncpa [#allocation6], 1 }
 0x18d   :  { %552 = vsyncpa [#allocation4], 1 }

</bundles_post_ra>
